<compile_context>
chip_gen: v5e
topology: v5e:2x2
jax: 0.10.0
libtpu: 0.0.40
codegen_flags: <defaults>
</compile_context>

<pallas_src>
import functools

import jax
import jax.numpy as jnp
from jax.experimental import pallas as pl
from jax.experimental.pallas import tpu as pltpu


def _round_up(x, m):
    return ((x + m - 1) // m) * m


def _mlp_kernel(idx_ref, x_ref, wg_ref, wu_ref, wd_ref, o_ref, acc_ref, *, clamp):
    # idx_ref: SMEM scalar (consumed by the index_maps, not needed here).
    # x_ref : (TM, D_in)      activation tile, storage dtype
    # wg_ref: (D_in, TI)      gate-proj column tile (layer dim squeezed)
    # wu_ref: (D_in, TI)      up-proj column tile
    # wd_ref: (TI, D_out)     down-proj row tile
    # o_ref : (TM, D_out)     output tile (same block across the I axis)
    # acc_ref: (TM, D_out) f32 VMEM accumulator
    del idx_ref
    ki = pl.program_id(1)

    @pl.when(ki == 0)
    def _():
        acc_ref[...] = jnp.zeros_like(acc_ref)

    x = x_ref[...]  # keep storage dtype; f32 accumulation via preferred_element_type
    gate = jnp.dot(x, wg_ref[...], preferred_element_type=jnp.float32)  # (TM, TI)
    up = jnp.dot(x, wu_ref[...], preferred_element_type=jnp.float32)    # (TM, TI)

    if clamp:
        gate = jnp.clip(gate, -100.0, 100.0)
    h = gate * jax.nn.sigmoid(gate) * up      # SiLU(gate) * up, fused on this I-slice
    if clamp:
        h = jnp.clip(h, -1000.0, 1000.0)

    acc_ref[...] += jnp.dot(h.astype(wd_ref.dtype), wd_ref[...],
                            preferred_element_type=jnp.float32)

    @pl.when(ki == pl.num_programs(1) - 1)
    def _():
        o_ref[...] = acc_ref[...].astype(o_ref.dtype)


def projection_qwen2_mlp(hidden_state, idx, wg_stack, wu_stack, wd_stack,
                         *, tm=256, ti=512, clamp=False, vmem_limit_bytes=None):
    """hidden_state: (B, S, D_in)
       idx: python int or int32 scalar — selects the adapter layer
       wg_stack, wu_stack: (L, D_in, I)   (PyTorch weight transposed)
       wd_stack: (L, I, D_out)
    """
    B, S, D_in = hidden_state.shape
    L, _, I = wg_stack.shape
    D_out = wd_stack.shape[-1]
    M = B * S
    out_dtype = hidden_state.dtype

    # Lane/sublane-friendly padded sizes (pad-with-zeros preserves the math:
    # padded input features multiply zero weight rows; padded intermediate
    # columns give SiLU(0)*0 = 0; padded output columns are sliced off).
    D_in_p = _round_up(D_in, 128)
    TM = min(tm, _round_up(M, 8))
    M_p = _round_up(M, TM)
    I_p = _round_up(I, 128)
    TI = min(ti, I_p)
    I_p = _round_up(I_p, TI)
    D_out_p = _round_up(D_out, 128)

    # NOTE: in a real deployment the weight padding below is done once at load
    # time, not per call.
    x2d = hidden_state.reshape(M, D_in)
    if (M_p, D_in_p) != (M, D_in):
        x2d = jnp.pad(x2d, ((0, M_p - M), (0, D_in_p - D_in)))
    if (D_in_p, I_p) != (D_in, I):
        wg_stack = jnp.pad(wg_stack, ((0, 0), (0, D_in_p - D_in), (0, I_p - I)))
        wu_stack = jnp.pad(wu_stack, ((0, 0), (0, D_in_p - D_in), (0, I_p - I)))
    if (I_p, D_out_p) != (I, D_out):
        wd_stack = jnp.pad(wd_stack, ((0, 0), (0, I_p - I), (0, D_out_p - D_out)))

    idx_arr = jnp.asarray([idx], dtype=jnp.int32)

    grid = (M_p // TM, I_p // TI)

    grid_spec = pltpu.PrefetchScalarGridSpec(
        num_scalar_prefetch=1,
        grid=grid,
        in_specs=[
            # activation tile: full D_in per step, new token tile per mi
            pl.BlockSpec((TM, D_in_p), lambda mi, ki, idx_ref: (mi, 0)),
            # gate / up column tiles: layer selected via the prefetched idx
            pl.BlockSpec((None, D_in_p, TI),
                         lambda mi, ki, idx_ref: (idx_ref[0], 0, ki)),
            pl.BlockSpec((None, D_in_p, TI),
                         lambda mi, ki, idx_ref: (idx_ref[0], 0, ki)),
            # down-proj row tile matching the current I slice
            pl.BlockSpec((None, TI, D_out_p),
                         lambda mi, ki, idx_ref: (idx_ref[0], ki, 0)),
        ],
        # same output block across the reduction axis → resident accumulator
        out_specs=pl.BlockSpec((TM, D_out_p), lambda mi, ki, idx_ref: (mi, 0)),
        scratch_shapes=[pltpu.VMEM((TM, D_out_p), jnp.float32)],
    )

    out2d = pl.pallas_call(
        functools.partial(_mlp_kernel, clamp=clamp),
        out_shape=jax.ShapeDtypeStruct((M_p, D_out_p), out_dtype),
        grid_spec=grid_spec,
        compiler_params=pltpu.CompilerParams(
            dimension_semantics=("parallel", "arbitrary"),
            vmem_limit_bytes=vmem_limit_bytes,
        ),
    )(idx_arr, x2d, wg_stack, wu_stack, wd_stack)

    return out2d[:M, :D_out].reshape(B, S, D_out)


def _reference(hidden_state, idx, wg_stack, wu_stack, wd_stack):
    x = hidden_state.astype(jnp.float32)
    wg = wg_stack[idx].astype(jnp.float32)
    wu = wu_stack[idx].astype(jnp.float32)
    wd = wd_stack[idx].astype(jnp.float32)
    gate = x @ wg
    up = x @ wu
    h = jax.nn.silu(gate) * up
    return h @ wd


def _make_inputs(key, B, S, input_size, output_size, intermediate_size, layers,
                 dtype=jnp.float32):
    kx, kg, ku, kd = jax.random.split(key, 4)
    hidden_state = jax.random.normal(kx, (B, S, input_size), dtype=dtype)
    # nn.Linear-style uniform(-1/sqrt(fan_in), 1/sqrt(fan_in)), stored (in, out).
    bg = 1.0 / (input_size ** 0.5)
    bd = 1.0 / (intermediate_size ** 0.5)
    wg = jax.random.uniform(kg, (layers, input_size, intermediate_size),
                            minval=-bg, maxval=bg, dtype=dtype)
    wu = jax.random.uniform(ku, (layers, input_size, intermediate_size),
                            minval=-bg, maxval=bg, dtype=dtype)
    wd = jax.random.uniform(kd, (layers, intermediate_size, output_size),
                            minval=-bd, maxval=bd, dtype=dtype)
    return hidden_state, wg, wu, wd


if __name__ == "__main__":
    key = jax.random.PRNGKey(0)
    k1, k2 = jax.random.split(key)

    # Test 1: module-sized demo (batch=2, seq=8, input=32, output=32,
    # intermediate = 2*input = 64, layers=2, pick idx=1). Exercises the padding
    # path (32/64 -> 128 lanes).
    B, S = 2, 8
    input_size, output_size = 32, 32
    intermediate_size = 2 * input_size
    layers, idx = 2, 1
    hs, wg, wu, wd = _make_inputs(k1, B, S, input_size, output_size,
                                  intermediate_size, layers)
    out = projection_qwen2_mlp(hs, idx, wg, wu, wd)
    out = jax.block_until_ready(out)
    ref = _reference(hs, idx, wg, wu, wd)
    assert out.shape == (B, S, output_size)
    assert jnp.allclose(out, ref, atol=1e-3, rtol=1e-3), "test1 mismatch vs reference"

    # Test 2: larger-but-still-small shapes that exercise the real tiled grid:
    # 2 token tiles x 2 reduction steps (tm=64, ti=128), f32 end-to-end.
    B2, S2 = 2, 64
    in2, out2_sz = 128, 128
    inter2 = 2 * in2
    layers2, idx2 = 3, 2
    hs2, wg2, wu2, wd2 = _make_inputs(k2, B2, S2, in2, out2_sz, inter2, layers2)
    out2 = projection_qwen2_mlp(hs2, idx2, wg2, wu2, wd2, tm=64, ti=128)
    out2 = jax.block_until_ready(out2)
    ref2 = _reference(hs2, idx2, wg2, wu2, wd2)
    assert out2.shape == (B2, S2, out2_sz)
    assert jnp.allclose(out2, ref2, atol=1e-3, rtol=1e-3), "test2 mismatch vs reference"

    print("KERNEL_OK")
</pallas_src>

<mosaic_0001>
module attributes {stable_mosaic.version = 11 : i64} {
  func.func @_mlp_kernel(%arg0: i32, %arg1: i32, %arg2: memref<1xi32, #tpu.memory_space<smem>>, %arg3: memref<16x128xf32, #tpu.memory_space<vmem>>, %arg4: memref<1x128x128xf32, #tpu.memory_space<vmem>>, %arg5: memref<1x128x128xf32, #tpu.memory_space<vmem>>, %arg6: memref<1x128x128xf32, #tpu.memory_space<vmem>>, %arg7: memref<16x128xf32, #tpu.memory_space<vmem>>, %arg8: memref<16x128xf32, #tpu.memory_space<vmem>>) attributes {dimension_semantics = [#tpu.dimension_semantics<parallel>, #tpu.dimension_semantics<arbitrary>], iteration_bounds = array<i64: 1, 1>, scalar_prefetch = 1 : i64, scratch_operands = 1 : i64, tpu.core_type = #tpu.core_type<tc>, window_params = [{transform_indices = @transform_0, window_bounds = array<i64: 16, 128>}, {transform_indices = @transform_1, window_bounds = array<i64: 1, 128, 128>}, {transform_indices = @transform_2, window_bounds = array<i64: 1, 128, 128>}, {transform_indices = @transform_3, window_bounds = array<i64: 1, 128, 128>}, {transform_indices = @transform_4, window_bounds = array<i64: 16, 128>}]} {
    %c0_i32 = arith.constant 0 : i32
    %0 = arith.cmpi eq, %arg1, %c0_i32 : i32
    %1 = arith.extui %0 : i1 to i32
    %c0_i32_0 = arith.constant 0 : i32
    %2 = arith.cmpi ne, %1, %c0_i32_0 : i32
    scf.if %2 {
      %cst_20 = arith.constant 0.000000e+00 : f32
      %26 = vector.broadcast %cst_20 : f32 to vector<16x128xf32>
      %c0_21 = arith.constant 0 : index
      %c0_22 = arith.constant 0 : index
      %27 = vector.load %arg8[%c0_21, %c0_22] : memref<16x128xf32, #tpu.memory_space<vmem>>, vector<16x128xf32>
      tpu.vector_store %arg8[%c0_21, %c0_22], %26 {strides = array<i32>} : memref<16x128xf32, #tpu.memory_space<vmem>>, vector<16x128xf32>,
    } else {
    }
    %c0 = arith.constant 0 : index
    %c0_1 = arith.constant 0 : index
    %3 = vector.load %arg3[%c0, %c0_1] : memref<16x128xf32, #tpu.memory_space<vmem>>, vector<16x128xf32>
    %c0_2 = arith.constant 0 : index
    %c0_3 = arith.constant 0 : index
    %c0_4 = arith.constant 0 : index
    %4 = vector.load %arg4[%c0_2, %c0_3, %c0_4] : memref<1x128x128xf32, #tpu.memory_space<vmem>>, vector<1x128x128xf32>
    %5 = vector.shape_cast %4 : vector<1x128x128xf32> to vector<128x128xf32>
    %cst = arith.constant dense<0.000000e+00> : vector<16x128xf32>
    %6 = tpu.matmul %3, %5, %cst {dimension_numbers = #tpu.dot_dimension_numbers<[1], [0], [0], [1], [0, 0, 1, 1], [], []>} : vector<16x128xf32>, vector<128x128xf32>, vector<16x128xf32> -> vector<16x128xf32>
    %c0_5 = arith.constant 0 : index
    %c0_6 = arith.constant 0 : index
    %c0_7 = arith.constant 0 : index
    %7 = vector.load %arg5[%c0_5, %c0_6, %c0_7] : memref<1x128x128xf32, #tpu.memory_space<vmem>>, vector<1x128x128xf32>
    %8 = vector.shape_cast %7 : vector<1x128x128xf32> to vector<128x128xf32>
    %cst_8 = arith.constant dense<0.000000e+00> : vector<16x128xf32>
    %9 = tpu.matmul %3, %8, %cst_8 {dimension_numbers = #tpu.dot_dimension_numbers<[1], [0], [0], [1], [0, 0, 1, 1], [], []>} : vector<16x128xf32>, vector<128x128xf32>, vector<16x128xf32> -> vector<16x128xf32>
    %10 = arith.negf %6 : vector<16x128xf32>
    %11 = math.exp %10 : vector<16x128xf32>
    %cst_9 = arith.constant 1.000000e+00 : f32
    %12 = vector.broadcast %cst_9 : f32 to vector<16x128xf32>
    %13 = arith.addf %12, %11 : vector<16x128xf32>
    %14 = arith.divf %12, %13 : vector<16x128xf32>
    %15 = arith.mulf %6, %14 : vector<16x128xf32>
    %16 = arith.mulf %15, %9 : vector<16x128xf32>
    %c0_10 = arith.constant 0 : index
    %c0_11 = arith.constant 0 : index
    %17 = vector.load %arg8[%c0_10, %c0_11] : memref<16x128xf32, #tpu.memory_space<vmem>>, vector<16x128xf32>
    %c0_12 = arith.constant 0 : index
    %c0_13 = arith.constant 0 : index
    %c0_14 = arith.constant 0 : index
    %18 = vector.load %arg6[%c0_12, %c0_13, %c0_14] : memref<1x128x128xf32, #tpu.memory_space<vmem>>, vector<1x128x128xf32>
    %19 = vector.shape_cast %18 : vector<1x128x128xf32> to vector<128x128xf32>
    %cst_15 = arith.constant dense<0.000000e+00> : vector<16x128xf32>
    %20 = tpu.matmul %16, %19, %cst_15 {dimension_numbers = #tpu.dot_dimension_numbers<[1], [0], [0], [1], [0, 0, 1, 1], [], []>} : vector<16x128xf32>, vector<128x128xf32>, vector<16x128xf32> -> vector<16x128xf32>
    %21 = arith.addf %17, %20 : vector<16x128xf32>
    %c0_16 = arith.constant 0 : index
    %c0_17 = arith.constant 0 : index
    %22 = vector.load %arg8[%c0_16, %c0_17] : memref<16x128xf32, #tpu.memory_space<vmem>>, vector<16x128xf32>
    tpu.vector_store %arg8[%c0_16, %c0_17], %21 {strides = array<i32>} : memref<16x128xf32, #tpu.memory_space<vmem>>, vector<16x128xf32>,
    %c0_i32_18 = arith.constant 0 : i32
    %23 = arith.cmpi eq, %arg1, %c0_i32_18 : i32
    %24 = arith.extui %23 : i1 to i32
    %c0_i32_19 = arith.constant 0 : i32
    %25 = arith.cmpi ne, %24, %c0_i32_19 : i32
    scf.if %25 {
      %c0_20 = arith.constant 0 : index
      %c0_21 = arith.constant 0 : index
      %26 = vector.load %arg8[%c0_20, %c0_21] : memref<16x128xf32, #tpu.memory_space<vmem>>, vector<16x128xf32>
      %c0_22 = arith.constant 0 : index
      %c0_23 = arith.constant 0 : index
      %27 = vector.load %arg7[%c0_22, %c0_23] : memref<16x128xf32, #tpu.memory_space<vmem>>, vector<16x128xf32>
      tpu.vector_store %arg7[%c0_22, %c0_23], %26 {strides = array<i32>} : memref<16x128xf32, #tpu.memory_space<vmem>>, vector<16x128xf32>,
    } else {
    }
    return
  }
  func.func @transform_0(%arg0: i32, %arg1: i32, %arg2: memref<1xi32, #tpu.memory_space<smem>>) -> (i32, i32) {
    %c0_i32 = arith.constant 0 : i32
    %c0_i32_0 = arith.constant 0 : i32
    return %arg0, %c0_i32 : i32, i32
  }
  func.func @transform_1(%arg0: i32, %arg1: i32, %arg2: memref<1xi32, #tpu.memory_space<smem>>) -> (i32, i32, i32) {
    %c0 = arith.constant 0 : index
    %0 = memref.load %arg2[%c0] : memref<1xi32, #tpu.memory_space<smem>>
    %c0_i32 = arith.constant 0 : i32
    %c0_i32_0 = arith.constant 0 : i32
    return %0, %c0_i32, %arg1 : i32, i32, i32
  }
  func.func @transform_2(%arg0: i32, %arg1: i32, %arg2: memref<1xi32, #tpu.memory_space<smem>>) -> (i32, i32, i32) {
    %c0 = arith.constant 0 : index
    %0 = memref.load %arg2[%c0] : memref<1xi32, #tpu.memory_space<smem>>
    %c0_i32 = arith.constant 0 : i32
    %c0_i32_0 = arith.constant 0 : i32
    return %0, %c0_i32, %arg1 : i32, i32, i32
  }
  func.func @transform_3(%arg0: i32, %arg1: i32, %arg2: memref<1xi32, #tpu.memory_space<smem>>) -> (i32, i32, i32) {
    %c0 = arith.constant 0 : index
    %0 = memref.load %arg2[%c0] : memref<1xi32, #tpu.memory_space<smem>>
    %c0_i32 = arith.constant 0 : i32
    %c0_i32_0 = arith.constant 0 : i32
    return %0, %arg1, %c0_i32 : i32, i32, i32
  }
  func.func @transform_4(%arg0: i32, %arg1: i32, %arg2: memref<1xi32, #tpu.memory_space<smem>>) -> (i32, i32) {
    %c0_i32 = arith.constant 0 : i32
    %c0_i32_0 = arith.constant 0 : i32
    return %arg0, %c0_i32 : i32, i32
  }
}

</mosaic_0001>

<bundles_post_ra>
// kernel: tpu_custom_call.1
= control target key start
LH: loop header
LB: loop body
LE: loop exit
PB: predicated region body
PF: predicated region fallthrough
CT: control target
= control target key end

     0   :  { %11 = vsyncpa [#allocation6], 0  ;;  %s571_s0 = inlined_call_operand.<no memory space> [shape: s32[1], index: 0, kind: input, shape index: {}]   ;;  %s572_s1 = inlined_call_operand.hbm [shape: f32[16,128], index: 1, kind: input, shape index: {}]   ;;  %s573_s2 = inlined_call_operand.hbm [shape: f32[2,128,128], index: 2, kind: input, shape index: {}]   ;;  %s574_s3 = inlined_call_operand.hbm [shape: f32[2,128,128], index: 3, kind: input, shape index: {}]   ;;  %s575_s4 = inlined_call_operand.hbm [shape: f32[2,128,128], index: 4, kind: input, shape index: {}]   ;;  %s576_s5 = inlined_call_operand.hbm [shape: f32[16,128], index: 5, kind: output, shape index: {}]  }
   0x1   :  { %12 = vsyncpa [#allocation9], 0 }
   0x2   :  { %13 = vsyncpa [#allocation12], 0 }
   0x3   :  { %14 = vsyncpa [#allocation7], 0  ;;  %s515_s20 = sshll.u32 %s571_s0, 7  ;;  %s475_s24 = smov [#allocation8]  }
   0x4   :  { %s35_s23 = scalar_lea.hbm %s573_s2, %s515_s20  ;;  %s38_s25 = sshll.u32 %s475_s24, 4  ;;  %s39_s25 = int_to_ptr.vmem [resolvable:$true] %s38_s25 }
   0x5   :  { %s36_s26 = sshll.u32 %s35_s23, 4  ;;  %s19_s29 = sshll.u32 %s572_s1, 4  ;;  %s37_s26 = int_to_ptr.hbm [resolvable:$true] %s36_s26  ;;  %s20_s29 = int_to_ptr.hbm [resolvable:$true] %s19_s29 }
   0x6   :  { %s347_s30 = sshra.s32 %s37_s26, 4  ;;  %s351_s8 = scalar_lea.hbm %s573_s2, 256  ;;  %s348_s30 = int_to_ptr.hbm [resolvable:$true] %s347_s30 }
   0x7   :  { %s349_s6 = scalar_lea.hbm %s348_s30, 128  ;;  %p352_p1 = scmp.lt.s32.totalorder %s348_s30, %s573_s2 }
   0x8   :  { %p350_p0 = scmp.ne.s32.totalorder %s348_s30, %s349_s6  ;;  %p353_p2 = scmp.lt.s32.totalorder %s351_s8, %s349_s6 }
   0xa   :  { %p354_p3 = por %p353_p2, %p352_p1 }
   0xc   :  { %p355_p4 = pnand %p354_p3, %p350_p0 }
   0xe   :  { %358 = shalt.err (!%p355_p4)
}
   0xf   :  { %s476_s11 = smov 128   ;;  %s477_s1 = smov 8  }
  0x10   :  { %44 = dma.hbm_to_vmem [thread:$0]  %s37_s26, 2048, %s39_s25, [#allocation9], %s476_s11, %s476_s11, %s477_s1  }
  0x11   :  { %s478_s12 = smov [#allocation5]   ;;  %s52_s16 = scalar_lea.hbm %s574_s3, %s515_s20 }
  0x12   :  { %s21_s13 = sshll.u32 %s478_s12, 4  ;;  %s53_s2 = sshll.u32 %s52_s16, 4  ;;  %s22_s13 = int_to_ptr.vmem [resolvable:$true] %s21_s13  ;;  %s54_s2 = int_to_ptr.hbm [resolvable:$true] %s53_s2 }
  0x13   :  { %27 = dma.hbm_to_vmem [thread:$0]  %s20_s29, 256, %s22_s13, [#allocation6], %s476_s11, %s476_s11, %s477_s1  }
  0x14   :  { %s479_s17 = smov [#allocation10]   ;;  %s69_s22 = scalar_lea.hbm %s575_s4, %s515_s20 }
  0x15   :  { %s55_s18 = sshll.u32 %s479_s17, 4  ;;  %s544_s23 = sshll.u32 %s69_s22, 4  ;;  %s56_s18 = int_to_ptr.vmem [resolvable:$true] %s55_s18  ;;  %s71_s23 = int_to_ptr.hbm [resolvable:$true] %s544_s23 }
  0x16   :  { %s395_s24 = sshra.s32 %s54_s2, 4  ;;  %s399_s28 = scalar_lea.hbm %s574_s3, 256  ;;  %s396_s24 = int_to_ptr.hbm [resolvable:$true] %s395_s24 }
  0x17   :  { %s397_s25 = scalar_lea.hbm %s396_s24, 128  ;;  %p400_p6 = scmp.lt.s32.totalorder %s396_s24, %s574_s3 }
  0x18   :  { %p398_p5 = scmp.ne.s32.totalorder %s396_s24, %s397_s25  ;;  %p401_p7 = scmp.lt.s32.totalorder %s399_s28, %s397_s25 }
  0x1a   :  { %p402_p8 = por %p401_p7, %p400_p6 }
  0x1c   :  { %p403_p9 = pnand %p402_p8, %p398_p5 }
  0x1e   :  { %406 = shalt.err (!%p403_p9)
}
  0x1f   :  { %61 = dma.hbm_to_vmem [thread:$0]  %s54_s2, 2048, %s56_s18, [#allocation9], %s476_s11, %s476_s11, %s477_s1  }
  0x20   :  { %s480_s20 = smov [#allocation11]   ;;  %s419_s0 = sshra.s32 %s71_s23, 4  ;;  %s420_s0 = int_to_ptr.hbm [resolvable:$true] %s419_s0 }
  0x21   :  { %s72_s6 = sshll.u32 %s480_s20, 4  ;;  %s421_s7 = scalar_lea.hbm %s420_s0, 128  ;;  %s73_s6 = int_to_ptr.vmem [resolvable:$true] %s72_s6 }
  0x22   :  { %p422_p10 = scmp.ne.s32.totalorder %s420_s0, %s421_s7  ;;  %s423_s3 = scalar_lea.hbm %s575_s4, 256 }
  0x23   :  { %p424_p11 = scmp.lt.s32.totalorder %s420_s0, %s575_s4  ;;  %p425_p12 = scmp.lt.s32.totalorder %s423_s3, %s421_s7 }
  0x25   :  { %p426_p13 = por %p425_p12, %p424_p11 }
  0x27   :  { %p427_p0 = pnand %p426_p13, %p422_p10 }
  0x29   :  { %430 = shalt.err (!%p427_p0)
}
  0x2a   :  { %78 = dma.hbm_to_vmem [thread:$0]  %s71_s23, 2048, %s73_s6, [#allocation12], %s476_s11, %s476_s11, %s477_s1  }
  0x2b   :  { %467 = dma.done.wait [#allocation6], 256  }
  0x2c   :  { %468 = vsyncadd [#allocation6], 4294967040 }
  0x2d   :  { %469 = dma.done.wait [#allocation9], 4096  }
  0x2e   :  { %470 = vsyncadd [#allocation9], 4294963200 }
  0x2f   :  { %471 = dma.done.wait [#allocation12], 2048  }
  0x30   :  { %472 = vsyncadd [#allocation12], 4294965248  ;;  %v121_v0 = vld [vmem:[#allocation8 + $0x78] sm:$0xff]  ;;  %v120_v1 = vld [vmem:[#allocation8 + $0x70] sm:$0xff]  ;;  %s481_s4 = smov [#allocation13]   ;;  %s284_s16 = sshll.u32 %s576_s5, 4  ;;  %s285_s16 = int_to_ptr.hbm [resolvable:$true] %s284_s16 }
  0x31   :  { %122 = vmatpush.msra.mxu0 %v121_v0  ;;  %316 = vmatpush.msra.mxu3 %v121_v0  ;;  %v119_v2 = vld [vmem:[#allocation8 + $0x68] sm:$0xff]  ;;  %v118_v3 = vld [vmem:[#allocation8 + $0x60] sm:$0xff]  ;;  %v160_v4 = vld [vmem:[#allocation10 + $0x78] sm:$0xff]  ;;  %s282_s13 = sshll.u32 %s481_s4, 4  ;;  %s283_s13 = int_to_ptr.vmem [resolvable:$true] %s282_s13 }
  0x32   :  { %v159_v5 = vld [vmem:[#allocation10 + $0x70] sm:$0xff]  ;;  %v117_v6 = vld [vmem:[#allocation8 + $0x58] sm:$0xff]  ;;  %161 = vmatpush.msra.mxu1 %v160_v4  ;;  %v158_v7 = vld [vmem:[#allocation10 + $0x68] sm:$0xff] }
  0x33   :  { %123 = vmatpush.msra.mxu0 %v120_v1  ;;  %317 = vmatpush.msra.mxu3 %v120_v1  ;;  %v116_v8 = vld [vmem:[#allocation8 + $0x50] sm:$0xff]  ;;  %v157_v9 = vld [vmem:[#allocation10 + $0x60] sm:$0xff]  ;;  %v115_v10 = vld [vmem:[#allocation8 + $0x48] sm:$0xff] }
  0x34   :  { %162 = vmatpush.msra.mxu1 %v159_v5  ;;  %v156_v11 = vld [vmem:[#allocation10 + $0x58] sm:$0xff]  ;;  %v114_v12 = vld [vmem:[#allocation8 + $0x40] sm:$0xff]  ;;  %v155_v13 = vld [vmem:[#allocation10 + $0x50] sm:$0xff] }
  0x35   :  { %124 = vmatpush.msra.mxu0 %v119_v2  ;;  %318 = vmatpush.msra.mxu3 %v119_v2  ;;  %v113_v14 = vld [vmem:[#allocation8 + $0x38] sm:$0xff]  ;;  %v154_v15 = vld [vmem:[#allocation10 + $0x48] sm:$0xff]  ;;  %v112_v16 = vld [vmem:[#allocation8 + $0x30] sm:$0xff] }
  0x36   :  { %163 = vmatpush.msra.mxu1 %v158_v7  ;;  %v153_v17 = vld [vmem:[#allocation10 + $0x40] sm:$0xff]  ;;  %v111_v18 = vld [vmem:[#allocation8 + $0x28] sm:$0xff]  ;;  %v152_v19 = vld [vmem:[#allocation10 + $0x38] sm:$0xff] }
  0x37   :  { %125 = vmatpush.msra.mxu0 %v118_v3  ;;  %319 = vmatpush.msra.mxu3 %v118_v3  ;;  %v110_v20 = vld [vmem:[#allocation8 + $0x20] sm:$0xff]  ;;  %v151_v21 = vld [vmem:[#allocation10 + $0x30] sm:$0xff]  ;;  %v109_v22 = vld [vmem:[#allocation8 + $0x18] sm:$0xff] }
  0x38   :  { %164 = vmatpush.msra.mxu1 %v157_v9  ;;  %v150_v23 = vld [vmem:[#allocation10 + $0x28] sm:$0xff]  ;;  %v108_v24 = vld [vmem:[#allocation8 + $0x10] sm:$0xff]  ;;  %v149_v25 = vld [vmem:[#allocation10 + $0x20] sm:$0xff] }
  0x39   :  { %126 = vmatpush.msra.mxu0 %v117_v6  ;;  %320 = vmatpush.msra.mxu3 %v117_v6  ;;  %v107_v26 = vld [vmem:[#allocation8 + $0x8] sm:$0xff]  ;;  %v148_v27 = vld [vmem:[#allocation10 + $0x18] sm:$0xff]  ;;  %v106_v28 = vld [vmem:[#allocation8] sm:$0xff] }
  0x3a   :  { %165 = vmatpush.msra.mxu1 %v156_v11  ;;  %v104_v29 = vld [vmem:[#allocation5] sm:$0xff]  ;;  %v105_v30 = vld [vmem:[#allocation5 + $0x8] sm:$0xff]  ;;  %v146_v32 = vld [vmem:[#allocation10 + $0x8] sm:$0xff] }
  0x3b   :  { %127 = vmatpush.msra.mxu0 %v116_v8  ;;  %321 = vmatpush.msra.mxu3 %v116_v8  ;;  %v147_v31 = vld [vmem:[#allocation10 + $0x10] sm:$0xff]  ;;  %v145_v33 = vld [vmem:[#allocation10] sm:$0xff]  ;;  %v243_v34 = vld [vmem:[#allocation11 + $0x78] sm:$0xff] }
  0x3c   :  { %166 = vmatpush.msra.mxu1 %v155_v13  ;;  %244 = vmatpush.msra.mxu2 %v243_v34  ;;  %v242_v35 = vld [vmem:[#allocation11 + $0x70] sm:$0xff]  ;;  %v241_v36 = vld [vmem:[#allocation11 + $0x68] sm:$0xff]  ;;  %v240_v37 = vld [vmem:[#allocation11 + $0x60] sm:$0xff] }
  0x3d   :  { %128 = vmatpush.msra.mxu0 %v115_v10  ;;  %322 = vmatpush.msra.mxu3 %v115_v10  ;;  %v239_v38 = vld [vmem:[#allocation11 + $0x58] sm:$0xff]  ;;  %v238_v39 = vld [vmem:[#allocation11 + $0x50] sm:$0xff]  ;;  %v237_v40 = vld [vmem:[#allocation11 + $0x48] sm:$0xff] }
  0x3e   :  { %167 = vmatpush.msra.mxu1 %v154_v15  ;;  %245 = vmatpush.msra.mxu2 %v242_v35  ;;  %v236_v41 = vld [vmem:[#allocation11 + $0x40] sm:$0xff]  ;;  %v235_v42 = vld [vmem:[#allocation11 + $0x38] sm:$0xff]  ;;  %v234_v43 = vld [vmem:[#allocation11 + $0x30] sm:$0xff] }
  0x3f   :  { %129 = vmatpush.msra.mxu0 %v114_v12  ;;  %323 = vmatpush.msra.mxu3 %v114_v12  ;;  %v233_v44 = vld [vmem:[#allocation11 + $0x28] sm:$0xff]  ;;  %v232_v45 = vld [vmem:[#allocation11 + $0x20] sm:$0xff]  ;;  %v231_v46 = vld [vmem:[#allocation11 + $0x18] sm:$0xff] }
  0x40   :  { %168 = vmatpush.msra.mxu1 %v153_v17  ;;  %246 = vmatpush.msra.mxu2 %v241_v36  ;;  %v230_v47 = vld [vmem:[#allocation11 + $0x10] sm:$0xff]  ;;  %v229_v48 = vld [vmem:[#allocation11 + $0x8] sm:$0xff]  ;;  %v228_v49 = vld [vmem:[#allocation11] sm:$0xff] }
  0x41   :  { %130 = vmatpush.msra.mxu0 %v113_v14  ;;  %324 = vmatpush.msra.mxu3 %v113_v14 }
  0x42   :  { %169 = vmatpush.msra.mxu1 %v152_v19  ;;  %247 = vmatpush.msra.mxu2 %v240_v37 }
  0x43   :  { %131 = vmatpush.msra.mxu0 %v112_v16  ;;  %325 = vmatpush.msra.mxu3 %v112_v16 }
  0x44   :  { %170 = vmatpush.msra.mxu1 %v151_v21  ;;  %248 = vmatpush.msra.mxu2 %v239_v38 }
  0x45   :  { %132 = vmatpush.msra.mxu0 %v111_v18  ;;  %326 = vmatpush.msra.mxu3 %v111_v18 }
  0x46   :  { %171 = vmatpush.msra.mxu1 %v150_v23  ;;  %249 = vmatpush.msra.mxu2 %v238_v39 }
  0x47   :  { %133 = vmatpush.msra.mxu0 %v110_v20  ;;  %327 = vmatpush.msra.mxu3 %v110_v20 }
  0x48   :  { %172 = vmatpush.msra.mxu1 %v149_v25  ;;  %250 = vmatpush.msra.mxu2 %v237_v40 }
  0x49   :  { %134 = vmatpush.msra.mxu0 %v109_v22  ;;  %328 = vmatpush.msra.mxu3 %v109_v22 }
  0x4a   :  { %173 = vmatpush.msra.mxu1 %v148_v27  ;;  %251 = vmatpush.msra.mxu2 %v236_v41 }
  0x4b   :  { %135 = vmatpush.msra.mxu0 %v108_v24  ;;  %329 = vmatpush.msra.mxu3 %v108_v24 }
  0x4c   :  { %174 = vmatpush.msra.mxu1 %v147_v31  ;;  %252 = vmatpush.msra.mxu2 %v235_v42 }
  0x4d   :  { %136 = vmatpush.msra.mxu0 %v107_v26  ;;  %330 = vmatpush.msra.mxu3 %v107_v26 }
  0x4e   :  { %175 = vmatpush.msra.mxu1 %v146_v32  ;;  %253 = vmatpush.msra.mxu2 %v234_v43 }
  0x4f   :  { %137 = vmatpush.msra.mxu0 %v106_v28  ;;  %331 = vmatpush.msra.mxu3 %v106_v28 }
  0x50   :  { %138 = vmatmul.f32.vlgmr.msra.gmra.mxu0 %v104_v29  ;;  %141 = vmatmul.f32.vlgmr.msra.gmra.mxu3 %v105_v30 }
  0x51   :  { %176 = vmatpush.msra.mxu1 %v145_v33  ;;  %254 = vmatpush.msra.mxu2 %v233_v44 }
  0x52   :  { %177 = vmatmul.f32.vlgmr.msra.gmra.mxu1 %v104_v29 }
  0x53   :  { %255 = vmatpush.msra.mxu2 %v232_v45 }
  0x55   :  { %256 = vmatpush.msra.mxu2 %v231_v46 }
  0x57   :  { %257 = vmatpush.msra.mxu2 %v230_v47 }
  0x59   :  { %258 = vmatpush.msra.mxu2 %v229_v48 }
  0x5a   :  { %180 = vmatmul.f32.gmra.mxu1 %v105_v30 }
  0x5b   :  { %259 = vmatpush.msra.mxu2 %v228_v49 }
  0xcd   :  { %v139_v50 = vpop.f32.mrf.mxu0 }
  0xce   :  { %v311_v51 = vmul.f32 -1.442695, %v139_v50 }
  0xcf   :  { %v178_v4 = vpop.f32.mrf.mxu1 }
  0xd0   :  { %339 = vpow2.f32 %v311_v51 }
  0xd3   :  { %v142_v52 = vpop.f32.mrf.mxu3 }
  0xd4   :  { %v312_v53 = vmul.f32 -1.442695, %v142_v52 }
  0xd6   :  { %v340_v54 = vpop.eup %339  ;;  %341 = vpow2.f32 %v312_v53 }
  0xd7   :  { %v190_v55 = vadd.f32 1.0, %v340_v54  ;;  %v181_v18 = vpop.f32.mrf.mxu1 }
  0xd9   :  { %343 = vrcp.f32 %v190_v55  ;;  %v203_v61 = vand.u32 2147483648, %v190_v55  ;;  %v201_v63 = vand.u32 2147483647, %v190_v55  ;;  %vm197_vm1 = vweird.f32 %v190_v55 }
  0xdb   :  { %v204_v3 = vor.u32 1.1754944e-38, %v203_v61  ;;  %vm202_vm3 = vcmp.eq.f32.partialorder %v201_v63, 8.507059e+37 }
  0xdc   :  { %v342_v56 = vpop.eup %341 }
  0xdd   :  { %v191_v57 = vadd.f32 1.0, %v342_v56 }
  0xdf   :  { %v344_v58 = vpop.eup %343  ;;  %345 = vrcp.f32 %v191_v57  ;;  %v218_v8 = vand.u32 2147483648, %v191_v57  ;;  %v216_v11 = vand.u32 2147483647, %v191_v57  ;;  %vm212_vm5 = vweird.f32 %v191_v57 }
  0xe0   :  { %v193_v59 = vmul.f32 %v344_v58, %v190_v55  ;;  %vm198_vm0 = vweird.f32 %v344_v58 }
  0xe1   :  { %vm199_vm2 = vmor %vm197_vm1, %vm198_vm0  ;;  %v219_v14 = vor.u32 1.1754944e-38, %v218_v8  ;;  %vm217_vm7 = vcmp.eq.f32.partialorder %v216_v11, 8.507059e+37 }
  0xe2   :  { %v194_v60 = vsub.f32 1.0, %v193_v59 }
  0xe4   :  { %v195_v62 = vmul.f32 %v344_v58, %v194_v60 }
  0xe5   :  { %v346_v0 = vpop.eup %345 }
  0xe6   :  { %v196_v1 = vadd.f32 %v344_v58, %v195_v62  ;;  %v208_v2 = vmul.f32 %v346_v0, %v191_v57  ;;  %vm213_vm4 = vweird.f32 %v346_v0 }
  0xe7   :  { %vm214_vm6 = vmor %vm212_vm5, %vm213_vm4 }
  0xe8   :  { %v200_v5 = vsel %vm199_vm2, %v344_v58, %v196_v1  ;;  %v209_v6 = vsub.f32 1.0, %v208_v2 }
  0xe9   :  { %v205_v7 = vsel %vm202_vm3, %v204_v3, %v200_v5 }
  0xea   :  { %v222_v9 = vmul.f32 %v205_v7, %v139_v50  ;;  %v210_v10 = vmul.f32 %v346_v0, %v209_v6 }
  0xec   :  { %v211_v12 = vadd.f32 %v346_v0, %v210_v10  ;;  %v224_v13 = vmul.f32 %v222_v9, %v178_v4 }
  0xee   :  { %v215_v15 = vsel %vm214_vm6, %v346_v0, %v211_v12  ;;  %260 = vmatmul.f32.vlgmr.msra.gmra.mxu2 %v224_v13 }
  0xef   :  { %v220_v16 = vsel %vm217_vm7, %v219_v14, %v215_v15 }
  0xf0   :  { %v223_v17 = vmul.f32 %v220_v16, %v142_v52 }
  0xf2   :  { %v225_v19 = vmul.f32 %v223_v17, %v181_v18 }
  0xf6   :  { %263 = vmatmul.f32.gmra.mxu2 %v225_v19 }
 0x171   :  { %v261_v20 = vpop.f32.mrf.mxu2 }
 0x172   :  { %276 = vst [vmem:[#allocation13] sm:$0xff] %v261_v20 }
 0x179   :  { %v264_v21 = vpop.f32.mrf.mxu2 }
 0x17a   :  { %277 = vst [vmem:[#allocation13 + $0x8] sm:$0xff] %v264_v21 }
 0x17b   :  { %290 = dma.vmem_to_hbm [thread:$0]  %s283_s13, 256, %s285_s16, [#allocation7], %s476_s11, %s476_s11, %s477_s1  }
 0x17c   :  { %473 = dma.done.wait [#allocation7], 256  }
 0x17d   :  { %474 = vsyncadd [#allocation7], 4294967040 }
 0x17e   :  { %295 = vsyncpa [#allocation6], 1 }
 0x17f   :  { %296 = vsyncpa [#allocation9], 1 }
 0x180   :  { %297 = vsyncpa [#allocation12], 1 }
 0x181   :  { %298 = vsyncpa [#allocation7], 1 }

</bundles_post_ra>
